<compile_context>
chip_gen: v6e
topology: v6e:2x2x1
jax: 0.10.0
libtpu: 0.0.40
codegen_flags: <defaults>
</compile_context>

<pallas_src>
import functools

import jax
import jax.numpy as jnp
from jax.experimental import pallas as pl
from jax.experimental.pallas import tpu as pltpu


def _round_up(x: int, m: int) -> int:
    return ((x + m - 1) // m) * m


def critic_ppo_kernel(x_ref, w1_ref, b1_ref, w2_ref, b2_ref, w3_ref, b3_ref, o_ref):
    # layer 1: Linear(state_dim -> mid_pad) + ReLU   (bf16 MXU, f32 accumulate)
    h1 = jnp.dot(x_ref[...], w1_ref[...], preferred_element_type=jnp.float32)
    h1 = jnp.maximum(h1 + b1_ref[...], 0.0)            # f32 VPU
    # layer 2: Linear(mid_pad -> mid_pad) + ReLU
    h2 = jnp.dot(h1.astype(jnp.bfloat16), w2_ref[...],
                 preferred_element_type=jnp.float32)
    h2 = jnp.maximum(h2 + b2_ref[...], 0.0)            # f32 VPU
    # layer 3: Linear(mid_pad -> 1) as a VPU multiply + XLU lane reduction
    # (avoids a 1-column MXU matmul); scalar bias is read from SMEM.
    v = jnp.sum(h2 * w3_ref[...], axis=-1, keepdims=True) + b3_ref[0, 0]
    o_ref[...] = v.astype(o_ref.dtype)


def critic_ppo_forward(state, params, *, block_b: int = 512):
    """state: (B, state_dim) f32; params: dict of w1,b1,w2,b2,w3,b3. Returns (B, 1) f32."""
    w1, b1, w2, b2, w3, b3 = (params[k] for k in ("w1", "b1", "w2", "b2", "w3", "b3"))
    B, state_dim = state.shape
    mid_dim = w1.shape[1]
    mid_pad = _round_up(max(mid_dim, 128), 128)
    pad_m = mid_pad - mid_dim

    # Zero-pad the hidden width to a 128-lane multiple (removes lane masking on
    # all VPU ops and on the second matmul's K dimension). Padding is exact:
    # padded columns stay 0 through ReLU and contribute 0 to the final sum.
    w1p = jnp.pad(w1, ((0, 0), (0, pad_m))).astype(jnp.bfloat16)
    b1p = jnp.pad(b1, ((0, 0), (0, pad_m)))                       # f32
    w2p = jnp.pad(w2, ((0, pad_m), (0, pad_m))).astype(jnp.bfloat16)
    b2p = jnp.pad(b2, ((0, 0), (0, pad_m)))                       # f32
    w3p = jnp.pad(w3, ((0, pad_m), (0, 0))).reshape(1, mid_pad)   # f32 row vector
    b3p = jnp.reshape(b3, (1, 1))                                 # f32 scalar

    # Pad the batch to a whole number of blocks; feed bf16 into the MXU.
    b_pad = _round_up(max(B, block_b), block_b)
    x = jnp.pad(state, ((0, b_pad - B), (0, 0))).astype(jnp.bfloat16)
    num_blocks = b_pad // block_b

    out = pl.pallas_call(
        critic_ppo_kernel,
        out_shape=jax.ShapeDtypeStruct((b_pad, 1), jnp.float32),
        grid=(num_blocks,),
        in_specs=[
            pl.BlockSpec((block_b, state_dim), lambda i: (i, 0)),   # batch-tiled input
            pl.BlockSpec((state_dim, mid_pad), lambda i: (0, 0)),   # VMEM-resident weights
            pl.BlockSpec((1, mid_pad), lambda i: (0, 0)),
            pl.BlockSpec((mid_pad, mid_pad), lambda i: (0, 0)),
            pl.BlockSpec((1, mid_pad), lambda i: (0, 0)),
            pl.BlockSpec((1, mid_pad), lambda i: (0, 0)),
            pl.BlockSpec(memory_space=pltpu.MemorySpace.SMEM),      # (1,1) scalar bias
        ],
        out_specs=pl.BlockSpec((block_b, 1), lambda i: (i, 0)),
        compiler_params=pltpu.CompilerParams(
            dimension_semantics=("parallel",)),
    )(x, w1p, b1p, w2p, b2p, w3p, b3p)
    return out[:B]


def init_params(key, state_dim, mid_dim):
    """Deterministic synthetic init (PyTorch-like uniform fan-in scaling)."""
    ks = jax.random.split(key, 6)

    def lin(kw, kb, fan_in, fan_out):
        bound = 1.0 / jnp.sqrt(fan_in)
        w = jax.random.uniform(kw, (fan_in, fan_out), jnp.float32, -bound, bound)
        b = jax.random.uniform(kb, (1, fan_out), jnp.float32, -bound, bound)
        return w, b

    w1, b1 = lin(ks[0], ks[1], state_dim, mid_dim)
    w2, b2 = lin(ks[2], ks[3], mid_dim, mid_dim)
    w3, b3 = lin(ks[4], ks[5], mid_dim, 1)
    return {"w1": w1, "b1": b1, "w2": w2, "b2": b2, "w3": w3, "b3": b3}


def reference_forward(state, p):
    """Matches the kernel's precision choices: bf16 matmul operands, f32 accumulation."""
    def bdot(a, b):
        return jax.lax.dot_general(
            a.astype(jnp.bfloat16), b.astype(jnp.bfloat16),
            (((1,), (0,)), ((), ())), preferred_element_type=jnp.float32)

    h1 = jnp.maximum(bdot(state, p["w1"]) + p["b1"], 0.0)
    h2 = jnp.maximum(bdot(h1, p["w2"]) + p["b2"], 0.0)
    return h2 @ p["w3"] + p["b3"]


if __name__ == "__main__":
    key = jax.random.PRNGKey(0)
    k_param, k_state = jax.random.split(key)

    batch, state_dim, mid_dim = 8, 16, 32   # small shapes; action_dim unused by the critic
    params = init_params(k_param, state_dim, mid_dim)
    state = jax.random.normal(k_state, (batch, state_dim), jnp.float32)

    fwd = jax.jit(functools.partial(critic_ppo_forward, block_b=512))
    out = jax.block_until_ready(fwd(state, params))

    ref = reference_forward(state, params)
    assert out.shape == (batch, 1)
    assert jnp.allclose(out, ref, atol=1e-3, rtol=1e-3)
    print("KERNEL_OK")
</pallas_src>

<mosaic_0001>
module attributes {stable_mosaic.version = 11 : i64} {
  func.func @critic_ppo_kernel(%arg0: i32, %arg1: memref<512x16xbf16, #tpu.memory_space<vmem>>, %arg2: memref<16x128xbf16, #tpu.memory_space<vmem>>, %arg3: memref<1x128xf32, #tpu.memory_space<vmem>>, %arg4: memref<128x128xbf16, #tpu.memory_space<vmem>>, %arg5: memref<1x128xf32, #tpu.memory_space<vmem>>, %arg6: memref<1x128xf32, #tpu.memory_space<vmem>>, %arg7: memref<1x1xf32, #tpu.memory_space<smem>>, %arg8: memref<512x1xf32, #tpu.memory_space<vmem>>) attributes {dimension_semantics = [#tpu.dimension_semantics<parallel>], iteration_bounds = array<i64: 1>, scalar_prefetch = 0 : i64, scratch_operands = 0 : i64, tpu.core_type = #tpu.core_type<tc>, window_params = [{transform_indices = @transform_0, window_bounds = array<i64: 512, 16>}, {pipeline_mode = #tpu.pipeline_mode<synchronous>, transform_indices = @transform_1, window_bounds = array<i64: 16, 128>}, {pipeline_mode = #tpu.pipeline_mode<synchronous>, transform_indices = @transform_2, window_bounds = array<i64: 1, 128>}, {pipeline_mode = #tpu.pipeline_mode<synchronous>, transform_indices = @transform_3, window_bounds = array<i64: 128, 128>}, {pipeline_mode = #tpu.pipeline_mode<synchronous>, transform_indices = @transform_4, window_bounds = array<i64: 1, 128>}, {pipeline_mode = #tpu.pipeline_mode<synchronous>, transform_indices = @transform_5, window_bounds = array<i64: 1, 128>}, {transform_indices = @transform_6, window_bounds = array<i64: 1, 1>}, {transform_indices = @transform_7, window_bounds = array<i64: 512, 1>}]} {
    %c0 = arith.constant 0 : index
    %c0_0 = arith.constant 0 : index
    %0 = vector.load %arg1[%c0, %c0_0] : memref<512x16xbf16, #tpu.memory_space<vmem>>, vector<512x16xbf16>
    %c0_1 = arith.constant 0 : index
    %c0_2 = arith.constant 0 : index
    %1 = vector.load %arg2[%c0_1, %c0_2] : memref<16x128xbf16, #tpu.memory_space<vmem>>, vector<16x128xbf16>
    %cst = arith.constant dense<0.000000e+00> : vector<512x128xf32>
    %2 = tpu.matmul %0, %1, %cst {dimension_numbers = #tpu.dot_dimension_numbers<[1], [0], [0], [1], [0, 0, 1, 1], [], []>} : vector<512x16xbf16>, vector<16x128xbf16>, vector<512x128xf32> -> vector<512x128xf32>
    %c0_3 = arith.constant 0 : index
    %c0_4 = arith.constant 0 : index
    %3 = vector.load %arg3[%c0_3, %c0_4] : memref<1x128xf32, #tpu.memory_space<vmem>>, vector<1x128xf32>
    %4 = vector.broadcast %3 : vector<1x128xf32> to vector<512x128xf32>
    %5 = arith.addf %2, %4 : vector<512x128xf32>
    %cst_5 = arith.constant 0.000000e+00 : f32
    %6 = vector.broadcast %cst_5 : f32 to vector<512x128xf32>
    %7 = arith.maximumf %5, %6 : vector<512x128xf32>
    %8 = arith.truncf %7 : vector<512x128xf32> to vector<512x128xbf16>
    %c0_6 = arith.constant 0 : index
    %c0_7 = arith.constant 0 : index
    %9 = vector.load %arg4[%c0_6, %c0_7] : memref<128x128xbf16, #tpu.memory_space<vmem>>, vector<128x128xbf16>
    %cst_8 = arith.constant dense<0.000000e+00> : vector<512x128xf32>
    %10 = tpu.matmul %8, %9, %cst_8 {dimension_numbers = #tpu.dot_dimension_numbers<[1], [0], [0], [1], [0, 0, 1, 1], [], []>} : vector<512x128xbf16>, vector<128x128xbf16>, vector<512x128xf32> -> vector<512x128xf32>
    %c0_9 = arith.constant 0 : index
    %c0_10 = arith.constant 0 : index
    %11 = vector.load %arg5[%c0_9, %c0_10] : memref<1x128xf32, #tpu.memory_space<vmem>>, vector<1x128xf32>
    %12 = vector.broadcast %11 : vector<1x128xf32> to vector<512x128xf32>
    %13 = arith.addf %10, %12 : vector<512x128xf32>
    %cst_11 = arith.constant 0.000000e+00 : f32
    %14 = vector.broadcast %cst_11 : f32 to vector<512x128xf32>
    %15 = arith.maximumf %13, %14 : vector<512x128xf32>
    %c0_12 = arith.constant 0 : index
    %c0_13 = arith.constant 0 : index
    %16 = vector.load %arg6[%c0_12, %c0_13] : memref<1x128xf32, #tpu.memory_space<vmem>>, vector<1x128xf32>
    %17 = vector.broadcast %16 : vector<1x128xf32> to vector<512x128xf32>
    %18 = arith.mulf %15, %17 : vector<512x128xf32>
    %cst_14 = arith.constant dense<0.000000e+00> : vector<512xf32>
    %19 = vector.multi_reduction <add>, %18, %cst_14 [1] : vector<512x128xf32> to vector<512xf32>
    %20 = vector.shape_cast %19 : vector<512xf32> to vector<512x1xf32>
    %c0_15 = arith.constant 0 : index
    %c0_16 = arith.constant 0 : index
    %21 = memref.load %arg7[%c0_15, %c0_16] : memref<1x1xf32, #tpu.memory_space<smem>>
    %22 = vector.broadcast %21 : f32 to vector<512x1xf32>
    %23 = arith.addf %20, %22 : vector<512x1xf32>
    %c0_17 = arith.constant 0 : index
    %c0_18 = arith.constant 0 : index
    %24 = vector.load %arg8[%c0_17, %c0_18] : memref<512x1xf32, #tpu.memory_space<vmem>>, vector<512x1xf32>
    tpu.vector_store %arg8[%c0_17, %c0_18], %23 {strides = array<i32>} : memref<512x1xf32, #tpu.memory_space<vmem>>, vector<512x1xf32>,
    return
  }
  func.func @transform_0(%arg0: i32) -> (i32, i32) {
    %c0_i32 = arith.constant 0 : i32
    %c0_i32_0 = arith.constant 0 : i32
    return %arg0, %c0_i32 : i32, i32
  }
  func.func @transform_1(%arg0: i32) -> (i32, i32) {
    %c0_i32 = arith.constant 0 : i32
    %c0_i32_0 = arith.constant 0 : i32
    %c0_i32_1 = arith.constant 0 : i32
    return %c0_i32, %c0_i32_0 : i32, i32
  }
  func.func @transform_2(%arg0: i32) -> (i32, i32) {
    %c0_i32 = arith.constant 0 : i32
    %c0_i32_0 = arith.constant 0 : i32
    %c0_i32_1 = arith.constant 0 : i32
    return %c0_i32, %c0_i32_0 : i32, i32
  }
  func.func @transform_3(%arg0: i32) -> (i32, i32) {
    %c0_i32 = arith.constant 0 : i32
    %c0_i32_0 = arith.constant 0 : i32
    %c0_i32_1 = arith.constant 0 : i32
    return %c0_i32, %c0_i32_0 : i32, i32
  }
  func.func @transform_4(%arg0: i32) -> (i32, i32) {
    %c0_i32 = arith.constant 0 : i32
    %c0_i32_0 = arith.constant 0 : i32
    %c0_i32_1 = arith.constant 0 : i32
    return %c0_i32, %c0_i32_0 : i32, i32
  }
  func.func @transform_5(%arg0: i32) -> (i32, i32) {
    %c0_i32 = arith.constant 0 : i32
    %c0_i32_0 = arith.constant 0 : i32
    %c0_i32_1 = arith.constant 0 : i32
    return %c0_i32, %c0_i32_0 : i32, i32
  }
  func.func @transform_6(%arg0: i32) -> (i32, i32) {
    %c0_i32 = arith.constant 0 : i32
    %c0_i32_0 = arith.constant 0 : i32
    %c0_i32_1 = arith.constant 0 : i32
    return %c0_i32, %c0_i32_0 : i32, i32
  }
  func.func @transform_7(%arg0: i32) -> (i32, i32) {
    %c0_i32 = arith.constant 0 : i32
    %c0_i32_0 = arith.constant 0 : i32
    return %arg0, %c0_i32 : i32, i32
  }
}

</mosaic_0001>

<bundles_post_ra>
// kernel: critic_ppo_forward.1
= control target key start
LH: loop header
LB: loop body
LE: loop exit
PB: predicated region body
PF: predicated region fallthrough
CT: control target
= control target key end

     0   :  { %vm267_vm0 = vcmask 130048   ;;  %vm1438_vm1 = vcmask 7168   ;;  %s2586_s1 = inlined_call_operand.vmem [shape: bf16[16,128], index: 1, kind: input, shape index: {}]   ;;  %s2587_s0 = inlined_call_operand.vmem [shape: bf16[512,16], index: 0, kind: input, shape index: {}]   ;;  %s2588_s3 = inlined_call_operand.vmem [shape: bf16[128,128], index: 3, kind: input, shape index: {}]   ;;  %s2589_s2 = inlined_call_operand.vmem [shape: f32[1,128], index: 2, kind: input, shape index: {}]   ;;  %s2590_s4 = inlined_call_operand.vmem [shape: f32[1,128], index: 4, kind: input, shape index: {}]   ;;  %s2591_s5 = inlined_call_operand.vmem [shape: f32[1,128], index: 5, kind: input, shape index: {}]   ;;  %s2592_s6 = inlined_call_operand.<no memory space> [shape: f32[1,1], index: 6, kind: input, shape index: {}]   ;;  %s2593_s7 = inlined_call_operand.vmem [shape: f32[512,1], index: 7, kind: output, shape index: {}]  }
   0x1   :  { %v1818_v0 = vld [vmem:[%s2586_s1] sm:$0xff]   ;;  %v1820_v2 = vld [vmem:[%s2587_s0 + $0x8] sm:$0xff]   ;;  %v1821_v3 = vld [vmem:[%s2587_s0 + $0x10] sm:$0xff]  }
   0x2   :  { %v1819_v1 = vld [vmem:[%s2587_s0] sm:$0xff]   ;;  %1656 = vmatprep.subr.bf16.mxu0 %v1818_v0  ;;  %v1822_v4 = vld [vmem:[%s2587_s0 + $0x18] sm:$0xff]   ;;  %v1824_v6 = vld [vmem:[%s2587_s0 + $0x28] sm:$0xff]  }
   0x3   :  { %1657 = vmatpush3.bf16.msra.mxu0 %v1818_v0  ;;  %1658 = vmatprep.mubr.msk.bf16.mxu0 %vm267_vm0, %v1819_v1  ;;  %v1823_v5 = vld [vmem:[%s2587_s0 + $0x20] sm:$0xff]   ;;  %v1825_v7 = vld [vmem:[%s2587_s0 + $0x30] sm:$0xff]   ;;  %v1841_v8 = vld [vmem:[%s2588_s3 + $0x38] sm:$0xff]  }
   0x4   :  { %1722 = vmatprep.subr.bf16.mxu0 %v1841_v8  ;;  %1802 = vmatprep.subr.bf16.mxu1 %v1841_v8  ;;  %v1826_v9 = vld [vmem:[%s2587_s0 + $0x38] sm:$0xff]   ;;  %v1827_v10 = vld [vmem:[%s2587_s0 + $0x40] sm:$0xff]   ;;  %v1846_v11 = vld [vmem:[%s2588_s3 + $0x30] sm:$0xff]  }
   0x5   :  { %1810 = vmatpush3.bf16.msra.mxu1 %v1841_v8  ;;  %v1851_v12 = vld [vmem:[%s2588_s3 + $0x28] sm:$0xff]   ;;  %v1829_v14 = vld [vmem:[%s2587_s0 + $0x50] sm:$0xff]   ;;  %v1854_v15 = vld [vmem:[%s2588_s3 + $0x20] sm:$0xff]  }
   0x6   :  { %1659 = vmatmul.mubr.msk.bf16.vlgmr.msra.gmra.mxu0 %vm267_vm0, %v1820_v2  ;;  %1803 = vmatprep.subr.bf16.mxu1 %v1846_v11  ;;  %v1828_v13 = vld [vmem:[%s2587_s0 + $0x48] sm:$0xff]   ;;  %v1855_v16 = vld [vmem:[%s2588_s3 + $0x18] sm:$0xff]   ;;  %v1856_v17 = vld [vmem:[%s2588_s3 + $0x10] sm:$0xff]  }
   0x7   :  { %1662 = vmatprep.mubr.msk.bf16.mxu0 %vm267_vm0, %v1821_v3  ;;  %1723 = vmatpush3.bf16.msra.mxu0 %v1841_v8  ;;  %v1830_v18 = vld [vmem:[%s2587_s0 + $0x58] sm:$0xff]   ;;  %v1831_v19 = vld [vmem:[%s2587_s0 + $0x60] sm:$0xff]   ;;  %v1857_v20 = vld [vmem:[%s2588_s3 + $0x8] sm:$0xff]  }
   0x8   :  { %1724 = vmatprep.subr.bf16.mxu0 %v1846_v11  ;;  %v1832_v21 = vld [vmem:[%s2587_s0 + $0x68] sm:$0xff]   ;;  %v1833_v22 = vld [vmem:[%s2587_s0 + $0x70] sm:$0xff]   ;;  %v1834_v23 = vld [vmem:[%s2587_s0 + $0x78] sm:$0xff]  }
   0x9   :  { %1811 = vmatpush3.bf16.msra.mxu1 %v1846_v11  ;;  %v1835_v24 = vld [vmem:[%s2587_s0 + $0x80] sm:$0xff]   ;;  %v1836_v25 = vld [vmem:[%s2587_s0 + $0x88] sm:$0xff]   ;;  %v1837_v26 = vld [vmem:[%s2587_s0 + $0x90] sm:$0xff]  }
   0xa   :  { %1804 = vmatprep.subr.bf16.mxu1 %v1851_v12  ;;  %v1858_v27 = vld [vmem:[%s2588_s3] sm:$0xff]   ;;  %v1838_v28 = vld [vmem:[%s2587_s0 + $0x98] sm:$0xff]   ;;  %v1840_v30 = vld [vmem:[%s2587_s0 + $0xa8] sm:$0xff]  }
   0xb   :  { %1725 = vmatpush3.bf16.msra.mxu0 %v1846_v11  ;;  %v1839_v29 = vld [vmem:[%s2587_s0 + $0xa0] sm:$0xff]   ;;  %v1842_v31 = vld [vmem:[%s2587_s0 + $0xb0] sm:$0xff]   ;;  %v1843_v32 = vld [vmem:[%s2587_s0 + $0xb8] sm:$0xff]  }
   0xc   :  { %1726 = vmatprep.subr.bf16.mxu0 %v1851_v12  ;;  %v1844_v33 = vld [vmem:[%s2587_s0 + $0xc0] sm:$0xff]   ;;  %v1845_v34 = vld [vmem:[%s2587_s0 + $0xc8] sm:$0xff]   ;;  %v1847_v35 = vld [vmem:[%s2587_s0 + $0xd0] sm:$0xff]  }
   0xd   :  { %1812 = vmatpush3.bf16.msra.mxu1 %v1851_v12  ;;  %v1848_v36 = vld [vmem:[%s2587_s0 + $0xd8] sm:$0xff]   ;;  %v1849_v37 = vld [vmem:[%s2587_s0 + $0xe0] sm:$0xff]   ;;  %v1850_v38 = vld [vmem:[%s2587_s0 + $0xe8] sm:$0xff]  }
   0xe   :  { %1663 = vmatmul.mubr.msk.bf16.gmra.mxu0 %vm267_vm0, %v1822_v4  ;;  %1805 = vmatprep.subr.bf16.mxu1 %v1854_v15  ;;  %v1852_v39 = vld [vmem:[%s2587_s0 + $0xf0] sm:$0xff]   ;;  %v1853_v40 = vld [vmem:[%s2587_s0 + $0xf8] sm:$0xff]   ;;  %v2057_v43 = vld [vmem:[%s2589_s2] ss:$0 sm:$0xff] }
   0xf   :  { %1666 = vmatprep.mubr.msk.bf16.mxu0 %vm267_vm0, %v1823_v5  ;;  %1727 = vmatpush3.bf16.msra.mxu0 %v1851_v12 }
  0x10   :  { %1728 = vmatprep.subr.bf16.mxu0 %v1854_v15 }
  0x11   :  { %1813 = vmatpush3.bf16.msra.mxu1 %v1854_v15 }
  0x12   :  { %1806 = vmatprep.subr.bf16.mxu1 %v1855_v16 }
  0x13   :  { %1729 = vmatpush3.bf16.msra.mxu0 %v1854_v15 }
  0x14   :  { %1730 = vmatprep.subr.bf16.mxu0 %v1855_v16 }
  0x15   :  { %1814 = vmatpush3.bf16.msra.mxu1 %v1855_v16 }
  0x16   :  { %1667 = vmatmul.mubr.msk.bf16.gmra.mxu0 %vm267_vm0, %v1824_v6  ;;  %1807 = vmatprep.subr.bf16.mxu1 %v1856_v17 }
  0x17   :  { %1670 = vmatprep.mubr.msk.bf16.mxu0 %vm267_vm0, %v1825_v7  ;;  %1731 = vmatpush3.bf16.msra.mxu0 %v1855_v16 }
  0x18   :  { %1732 = vmatprep.subr.bf16.mxu0 %v1856_v17 }
  0x19   :  { %1815 = vmatpush3.bf16.msra.mxu1 %v1856_v17 }
  0x1a   :  { %1808 = vmatprep.subr.bf16.mxu1 %v1857_v20 }
  0x1b   :  { %1733 = vmatpush3.bf16.msra.mxu0 %v1856_v17 }
  0x1c   :  { %1734 = vmatprep.subr.bf16.mxu0 %v1857_v20 }
  0x1d   :  { %1816 = vmatpush3.bf16.msra.mxu1 %v1857_v20 }
  0x1e   :  { %1671 = vmatmul.mubr.msk.bf16.gmra.mxu0 %vm267_vm0, %v1826_v9  ;;  %1809 = vmatprep.subr.bf16.mxu1 %v1858_v27 }
  0x1f   :  { %1674 = vmatprep.mubr.msk.bf16.mxu0 %vm267_vm0, %v1827_v10  ;;  %1735 = vmatpush3.bf16.msra.mxu0 %v1857_v20 }
  0x20   :  { %1736 = vmatprep.subr.bf16.mxu0 %v1858_v27 }
  0x21   :  { %1817 = vmatpush3.bf16.msra.mxu1 %v1858_v27 }
  0x23   :  { %1737 = vmatpush3.bf16.msra.mxu0 %v1858_v27 }
  0x26   :  { %1675 = vmatmul.mubr.msk.bf16.gmra.mxu0 %vm267_vm0, %v1828_v13 }
  0x27   :  { %1678 = vmatprep.mubr.msk.bf16.mxu0 %vm267_vm0, %v1829_v14 }
  0x2e   :  { %1679 = vmatmul.mubr.msk.bf16.gmra.mxu0 %vm267_vm0, %v1830_v18 }
  0x2f   :  { %1682 = vmatprep.mubr.msk.bf16.mxu0 %vm267_vm0, %v1831_v19 }
  0x36   :  { %1683 = vmatmul.mubr.msk.bf16.gmra.mxu0 %vm267_vm0, %v1832_v21 }
  0x37   :  { %1686 = vmatprep.mubr.msk.bf16.mxu0 %vm267_vm0, %v1833_v22 }
  0x3e   :  { %1687 = vmatmul.mubr.msk.bf16.gmra.mxu0 %vm267_vm0, %v1834_v23 }
  0x3f   :  { %1690 = vmatprep.mubr.msk.bf16.mxu0 %vm267_vm0, %v1835_v24 }
  0x46   :  { %1691 = vmatmul.mubr.msk.bf16.gmra.mxu0 %vm267_vm0, %v1836_v25 }
  0x47   :  { %1694 = vmatprep.mubr.msk.bf16.mxu0 %vm267_vm0, %v1837_v26 }
  0x4e   :  { %1695 = vmatmul.mubr.msk.bf16.gmra.mxu0 %vm267_vm0, %v1838_v28 }
  0x4f   :  { %1698 = vmatprep.mubr.msk.bf16.mxu0 %vm267_vm0, %v1839_v29 }
  0x56   :  { %1699 = vmatmul.mubr.msk.bf16.gmra.mxu0 %vm267_vm0, %v1840_v30 }
  0x57   :  { %1702 = vmatprep.mubr.msk.bf16.mxu0 %vm267_vm0, %v1842_v31 }
  0x5e   :  { %1703 = vmatmul.mubr.msk.bf16.gmra.mxu0 %vm267_vm0, %v1843_v32 }
  0x5f   :  { %1706 = vmatprep.mubr.msk.bf16.mxu0 %vm267_vm0, %v1844_v33 }
  0x66   :  { %1707 = vmatmul.mubr.msk.bf16.gmra.mxu0 %vm267_vm0, %v1845_v34 }
  0x67   :  { %1710 = vmatprep.mubr.msk.bf16.mxu0 %vm267_vm0, %v1847_v35 }
  0x6e   :  { %1711 = vmatmul.mubr.msk.bf16.gmra.mxu0 %vm267_vm0, %v1848_v36 }
  0x6f   :  { %1714 = vmatprep.mubr.msk.bf16.mxu0 %vm267_vm0, %v1849_v37 }
  0x76   :  { %1715 = vmatmul.mubr.msk.bf16.gmra.mxu0 %vm267_vm0, %v1850_v38 }
  0x77   :  { %1718 = vmatprep.mubr.msk.bf16.mxu0 %vm267_vm0, %v1852_v39 }
  0x7e   :  { %1719 = vmatmul.mubr.msk.bf16.gmra.mxu0 %vm267_vm0, %v1853_v40 }
  0xc6   :  { %v1660_v41 = vpop.f32.mrf.mxu0 }
  0xc7   :  { %v407_v47 = vadd.f32 %v1660_v41, %v2057_v43 }
  0xc8   :  { %v398_v42 = vpop.f32.mrf.mxu0 }
  0xc9   :  { %v399_v45 = vadd.f32 %v2057_v43, %v398_v42  ;;  %v655_v54 = vmax.f32 %v407_v47, 0.0 }
  0xca   :  { %v1661_v44 = vpop.f32.mrf.mxu0 }
  0xcb   :  { %v410_v46 = vadd.f32 %v1661_v44, %v2057_v43  ;;  %v653_v52 = vmax.f32 %v399_v45, 0.0 }
  0xcc   :  { %v401_v48 = vpop.f32.mrf.mxu0 }
  0xcd   :  { %v402_v49 = vadd.f32 %v2057_v43, %v401_v48  ;;  %v656_v50 = vmax.f32 %v410_v46, 0.0 }
  0xce   :  { %v1664_v51 = vpop.f32.mrf.mxu0 }
  0xcf   :  { %v654_v53 = vmax.f32 %v402_v49, 0.0  ;;  %v718_v57 = vpack.c.bf16 %v656_v50, %v655_v54  ;;  %v423_v61 = vadd.f32 %v1664_v51, %v2057_v43 }
  0xd0   :  { %v414_v55 = vpop.f32.mrf.mxu0 }
  0xd1   :  { %v717_v56 = vpack.c.bf16 %v654_v53, %v653_v52  ;;  %v415_v59 = vadd.f32 %v2057_v43, %v414_v55  ;;  %v659_v4 = vmax.f32 %v423_v61, 0.0 }
  0xd2   :  { %v1665_v58 = vpop.f32.mrf.mxu0 }
  0xd3   :  { %v426_v60 = vadd.f32 %v1665_v58, %v2057_v43  ;;  %1738 = vmatprep.mubr.bf16.mxu0 %v717_v56  ;;  %v657_v2 = vmax.f32 %v415_v59, 0.0 }
  0xd4   :  { %v417_v62 = vpop.f32.mrf.mxu0  ;;  %1739 = vmatmul.mubr.bf16.vlgmr.msra.gmra.mxu0 %v718_v57 }
  0xd5   :  { %v418_v63 = vadd.f32 %v2057_v43, %v417_v62  ;;  %v660_v0 = vmax.f32 %v426_v60, 0.0 }
  0xd6   :  { %v1668_v1 = vpop.f32.mrf.mxu0 }
  0xd7   :  { %v658_v3 = vmax.f32 %v418_v63, 0.0  ;;  %v720_v7 = vpack.c.bf16 %v660_v0, %v659_v4  ;;  %v439_v11 = vadd.f32 %v1668_v1, %v2057_v43 }
  0xd8   :  { %v430_v5 = vpop.f32.mrf.mxu0 }
  0xd9   :  { %v719_v6 = vpack.c.bf16 %v658_v3, %v657_v2  ;;  %v431_v9 = vadd.f32 %v2057_v43, %v430_v5  ;;  %v663_v18 = vmax.f32 %v439_v11, 0.0 }
  0xda   :  { %v1669_v8 = vpop.f32.mrf.mxu0 }
  0xdb   :  { %v442_v10 = vadd.f32 %v1669_v8, %v2057_v43  ;;  %1742 = vmatprep.mubr.bf16.mxu1 %v719_v6  ;;  %v661_v16 = vmax.f32 %v431_v9, 0.0 }
  0xdc   :  { %v433_v12 = vpop.f32.mrf.mxu0  ;;  %1743 = vmatmul.mubr.bf16.vlgmr.msra.gmra.mxu1 %v720_v7 }
  0xdd   :  { %v434_v13 = vadd.f32 %v2057_v43, %v433_v12  ;;  %v664_v14 = vmax.f32 %v442_v10, 0.0 }
  0xde   :  { %v1672_v15 = vpop.f32.mrf.mxu0 }
  0xdf   :  { %v662_v17 = vmax.f32 %v434_v13, 0.0  ;;  %v722_v21 = vpack.c.bf16 %v664_v14, %v663_v18  ;;  %v455_v25 = vadd.f32 %v1672_v15, %v2057_v43 }
  0xe0   :  { %v446_v19 = vpop.f32.mrf.mxu0 }
  0xe1   :  { %v721_v20 = vpack.c.bf16 %v662_v17, %v661_v16  ;;  %v447_v23 = vadd.f32 %v2057_v43, %v446_v19  ;;  %v667_v32 = vmax.f32 %v455_v25, 0.0 }
  0xe2   :  { %v1673_v22 = vpop.f32.mrf.mxu0 }
  0xe3   :  { %v458_v24 = vadd.f32 %v1673_v22, %v2057_v43  ;;  %1746 = vmatprep.mubr.bf16.mxu1 %v721_v20  ;;  %v665_v30 = vmax.f32 %v447_v23, 0.0 }
  0xe4   :  { %v449_v26 = vpop.f32.mrf.mxu0  ;;  %1747 = vmatmul.mubr.bf16.gmra.mxu1 %v722_v21 }
  0xe5   :  { %v450_v27 = vadd.f32 %v2057_v43, %v449_v26  ;;  %v668_v28 = vmax.f32 %v458_v24, 0.0 }
  0xe6   :  { %v1676_v29 = vpop.f32.mrf.mxu0 }
  0xe7   :  { %v666_v31 = vmax.f32 %v450_v27, 0.0  ;;  %v724_v35 = vpack.c.bf16 %v668_v28, %v667_v32  ;;  %v471_v39 = vadd.f32 %v1676_v29, %v2057_v43 }
  0xe8   :  { %v462_v33 = vpop.f32.mrf.mxu0 }
  0xe9   :  { %v723_v34 = vpack.c.bf16 %v666_v31, %v665_v30  ;;  %v463_v37 = vadd.f32 %v2057_v43, %v462_v33  ;;  %v671_v47 = vmax.f32 %v471_v39, 0.0 }
  0xea   :  { %v1677_v36 = vpop.f32.mrf.mxu0 }
  0xeb   :  { %v474_v38 = vadd.f32 %v1677_v36, %v2057_v43  ;;  %1750 = vmatprep.mubr.bf16.mxu1 %v723_v34  ;;  %v669_v45 = vmax.f32 %v463_v37, 0.0 }
  0xec   :  { %v465_v40 = vpop.f32.mrf.mxu0  ;;  %1751 = vmatmul.mubr.bf16.gmra.mxu1 %v724_v35 }
  0xed   :  { %v466_v41 = vadd.f32 %v2057_v43, %v465_v40  ;;  %v672_v42 = vmax.f32 %v474_v38, 0.0 }
  0xee   :  { %v1680_v44 = vpop.f32.mrf.mxu0 }
  0xef   :  { %v670_v46 = vmax.f32 %v466_v41, 0.0  ;;  %v726_v50 = vpack.c.bf16 %v672_v42, %v671_v47  ;;  %v487_v54 = vadd.f32 %v1680_v44, %v2057_v43 }
  0xf0   :  { %v478_v48 = vpop.f32.mrf.mxu0 }
  0xf1   :  { %v725_v49 = vpack.c.bf16 %v670_v46, %v669_v45  ;;  %v479_v52 = vadd.f32 %v2057_v43, %v478_v48  ;;  %v675_v61 = vmax.f32 %v487_v54, 0.0 }
  0xf2   :  { %v1681_v51 = vpop.f32.mrf.mxu0 }
  0xf3   :  { %v490_v53 = vadd.f32 %v1681_v51, %v2057_v43  ;;  %1754 = vmatprep.mubr.bf16.mxu1 %v725_v49  ;;  %v673_v59 = vmax.f32 %v479_v52, 0.0 }
  0xf4   :  { %v481_v55 = vpop.f32.mrf.mxu0  ;;  %1755 = vmatmul.mubr.bf16.gmra.mxu1 %v726_v50 }
  0xf5   :  { %v482_v56 = vadd.f32 %v2057_v43, %v481_v55  ;;  %v676_v57 = vmax.f32 %v490_v53, 0.0 }
  0xf6   :  { %v1684_v58 = vpop.f32.mrf.mxu0 }
  0xf7   :  { %v674_v60 = vmax.f32 %v482_v56, 0.0  ;;  %v728_v0 = vpack.c.bf16 %v676_v57, %v675_v61  ;;  %v503_v4 = vadd.f32 %v1684_v58, %v2057_v43 }
  0xf8   :  { %v494_v62 = vpop.f32.mrf.mxu0 }
  0xf9   :  { %v727_v63 = vpack.c.bf16 %v674_v60, %v673_v59  ;;  %v495_v2 = vadd.f32 %v2057_v43, %v494_v62  ;;  %v679_v11 = vmax.f32 %v503_v4, 0.0 }
  0xfa   :  { %v1685_v1 = vpop.f32.mrf.mxu0 }
  0xfb   :  { %v506_v3 = vadd.f32 %v1685_v1, %v2057_v43  ;;  %1758 = vmatprep.mubr.bf16.mxu1 %v727_v63  ;;  %v677_v9 = vmax.f32 %v495_v2, 0.0 }
  0xfc   :  { %v497_v5 = vpop.f32.mrf.mxu0  ;;  %1759 = vmatmul.mubr.bf16.gmra.mxu1 %v728_v0 }
  0xfd   :  { %v498_v6 = vadd.f32 %v2057_v43, %v497_v5  ;;  %v680_v7 = vmax.f32 %v506_v3, 0.0 }
  0xfe   :  { %v1688_v8 = vpop.f32.mrf.mxu0 }
  0xff   :  { %v678_v10 = vmax.f32 %v498_v6, 0.0  ;;  %v730_v14 = vpack.c.bf16 %v680_v7, %v679_v11  ;;  %v519_v18 = vadd.f32 %v1688_v8, %v2057_v43 }
 0x100   :  { %v510_v12 = vpop.f32.mrf.mxu0 }
 0x101   :  { %v729_v13 = vpack.c.bf16 %v678_v10, %v677_v9  ;;  %v511_v16 = vadd.f32 %v2057_v43, %v510_v12  ;;  %v683_v25 = vmax.f32 %v519_v18, 0.0 }
 0x102   :  { %v1689_v15 = vpop.f32.mrf.mxu0 }
 0x103   :  { %v522_v17 = vadd.f32 %v1689_v15, %v2057_v43  ;;  %1762 = vmatprep.mubr.bf16.mxu1 %v729_v13  ;;  %v681_v23 = vmax.f32 %v511_v16, 0.0 }
 0x104   :  { %v513_v19 = vpop.f32.mrf.mxu0  ;;  %1763 = vmatmul.mubr.bf16.gmra.mxu1 %v730_v14 }
 0x105   :  { %v514_v20 = vadd.f32 %v2057_v43, %v513_v19  ;;  %v684_v21 = vmax.f32 %v522_v17, 0.0 }
 0x106   :  { %v1692_v22 = vpop.f32.mrf.mxu0 }
 0x107   :  { %v682_v24 = vmax.f32 %v514_v20, 0.0  ;;  %v732_v28 = vpack.c.bf16 %v684_v21, %v683_v25  ;;  %v535_v32 = vadd.f32 %v1692_v22, %v2057_v43 }
 0x108   :  { %v526_v26 = vpop.f32.mrf.mxu0 }
 0x109   :  { %v731_v27 = vpack.c.bf16 %v682_v24, %v681_v23  ;;  %v527_v30 = vadd.f32 %v2057_v43, %v526_v26  ;;  %v687_v39 = vmax.f32 %v535_v32, 0.0 }
 0x10a   :  { %v1693_v29 = vpop.f32.mrf.mxu0 }
 0x10b   :  { %v538_v31 = vadd.f32 %v1693_v29, %v2057_v43  ;;  %1766 = vmatprep.mubr.bf16.mxu1 %v731_v27  ;;  %v685_v37 = vmax.f32 %v527_v30, 0.0 }
 0x10c   :  { %v529_v33 = vpop.f32.mrf.mxu0  ;;  %1767 = vmatmul.mubr.bf16.gmra.mxu1 %v732_v28 }
 0x10d   :  { %v530_v34 = vadd.f32 %v2057_v43, %v529_v33  ;;  %v688_v35 = vmax.f32 %v538_v31, 0.0 }
 0x10e   :  { %v1696_v36 = vpop.f32.mrf.mxu0 }
 0x10f   :  { %v686_v38 = vmax.f32 %v530_v34, 0.0  ;;  %v734_v42 = vpack.c.bf16 %v688_v35, %v687_v39  ;;  %v551_v47 = vadd.f32 %v1696_v36, %v2057_v43 }
 0x110   :  { %v542_v40 = vpop.f32.mrf.mxu0 }
 0x111   :  { %v733_v41 = vpack.c.bf16 %v686_v38, %v685_v37  ;;  %v543_v45 = vadd.f32 %v2057_v43, %v542_v40  ;;  %v691_v54 = vmax.f32 %v551_v47, 0.0 }
 0x112   :  { %v1697_v44 = vpop.f32.mrf.mxu0 }
 0x113   :  { %v554_v46 = vadd.f32 %v1697_v44, %v2057_v43  ;;  %1770 = vmatprep.mubr.bf16.mxu1 %v733_v41  ;;  %v689_v52 = vmax.f32 %v543_v45, 0.0 }
 0x114   :  { %v545_v48 = vpop.f32.mrf.mxu0  ;;  %1771 = vmatmul.mubr.bf16.gmra.mxu1 %v734_v42 }
 0x115   :  { %v546_v49 = vadd.f32 %v2057_v43, %v545_v48  ;;  %v692_v50 = vmax.f32 %v554_v46, 0.0 }
 0x116   :  { %v1700_v51 = vpop.f32.mrf.mxu0 }
 0x117   :  { %v690_v53 = vmax.f32 %v546_v49, 0.0  ;;  %v736_v57 = vpack.c.bf16 %v692_v50, %v691_v54  ;;  %v567_v61 = vadd.f32 %v1700_v51, %v2057_v43 }
 0x118   :  { %v558_v55 = vpop.f32.mrf.mxu0 }
 0x119   :  { %v735_v56 = vpack.c.bf16 %v690_v53, %v689_v52  ;;  %v559_v59 = vadd.f32 %v2057_v43, %v558_v55  ;;  %v695_v4 = vmax.f32 %v567_v61, 0.0 }
 0x11a   :  { %v1701_v58 = vpop.f32.mrf.mxu0 }
 0x11b   :  { %v570_v60 = vadd.f32 %v1701_v58, %v2057_v43  ;;  %1774 = vmatprep.mubr.bf16.mxu1 %v735_v56  ;;  %v693_v2 = vmax.f32 %v559_v59, 0.0 }
 0x11c   :  { %v561_v62 = vpop.f32.mrf.mxu0  ;;  %1775 = vmatmul.mubr.bf16.gmra.mxu1 %v736_v57 }
 0x11d   :  { %v562_v63 = vadd.f32 %v2057_v43, %v561_v62  ;;  %v696_v0 = vmax.f32 %v570_v60, 0.0 }
 0x11e   :  { %v1704_v1 = vpop.f32.mrf.mxu0 }
 0x11f   :  { %v694_v3 = vmax.f32 %v562_v63, 0.0  ;;  %v738_v7 = vpack.c.bf16 %v696_v0, %v695_v4  ;;  %v583_v11 = vadd.f32 %v1704_v1, %v2057_v43 }
 0x120   :  { %v574_v5 = vpop.f32.mrf.mxu0 }
 0x121   :  { %v737_v6 = vpack.c.bf16 %v694_v3, %v693_v2  ;;  %v575_v9 = vadd.f32 %v2057_v43, %v574_v5  ;;  %v699_v18 = vmax.f32 %v583_v11, 0.0 }
 0x122   :  { %v1705_v8 = vpop.f32.mrf.mxu0 }
 0x123   :  { %v586_v10 = vadd.f32 %v1705_v8, %v2057_v43  ;;  %1778 = vmatprep.mubr.bf16.mxu1 %v737_v6  ;;  %v697_v16 = vmax.f32 %v575_v9, 0.0 }
 0x124   :  { %v577_v12 = vpop.f32.mrf.mxu0  ;;  %1779 = vmatmul.mubr.bf16.gmra.mxu1 %v738_v7 }
 0x125   :  { %v578_v13 = vadd.f32 %v2057_v43, %v577_v12  ;;  %v700_v14 = vmax.f32 %v586_v10, 0.0 }
 0x126   :  { %v1708_v15 = vpop.f32.mrf.mxu0 }
 0x127   :  { %v698_v17 = vmax.f32 %v578_v13, 0.0  ;;  %v740_v21 = vpack.c.bf16 %v700_v14, %v699_v18  ;;  %v599_v25 = vadd.f32 %v1708_v15, %v2057_v43  ;;  %v2126_v13 = vld [vmem:[%s2590_s4] ss:$0 sm:$0xff] }
 0x128   :  { %v590_v19 = vpop.f32.mrf.mxu0 }
 0x129   :  { %v739_v20 = vpack.c.bf16 %v698_v17, %v697_v16  ;;  %v591_v23 = vadd.f32 %v2057_v43, %v590_v19  ;;  %v703_v32 = vmax.f32 %v599_v25, 0.0 }
 0x12a   :  { %v1709_v22 = vpop.f32.mrf.mxu0 }
 0x12b   :  { %v602_v24 = vadd.f32 %v1709_v22, %v2057_v43  ;;  %1782 = vmatprep.mubr.bf16.mxu1 %v739_v20  ;;  %v701_v30 = vmax.f32 %v591_v23, 0.0 }
 0x12c   :  { %v593_v26 = vpop.f32.mrf.mxu0  ;;  %1783 = vmatmul.mubr.bf16.gmra.mxu1 %v740_v21 }
 0x12d   :  { %v594_v27 = vadd.f32 %v2057_v43, %v593_v26  ;;  %v704_v28 = vmax.f32 %v602_v24, 0.0 }
 0x12e   :  { %v1712_v29 = vpop.f32.mrf.mxu0 }
 0x12f   :  { %v702_v31 = vmax.f32 %v594_v27, 0.0  ;;  %v742_v35 = vpack.c.bf16 %v704_v28, %v703_v32  ;;  %v615_v39 = vadd.f32 %v1712_v29, %v2057_v43 }
 0x130   :  { %v606_v33 = vpop.f32.mrf.mxu0 }
 0x131   :  { %v741_v34 = vpack.c.bf16 %v702_v31, %v701_v30  ;;  %v607_v37 = vadd.f32 %v2057_v43, %v606_v33  ;;  %v707_v47 = vmax.f32 %v615_v39, 0.0 }
 0x132   :  { %v1713_v36 = vpop.f32.mrf.mxu0 }
 0x133   :  { %v618_v38 = vadd.f32 %v1713_v36, %v2057_v43  ;;  %1786 = vmatprep.mubr.bf16.mxu1 %v741_v34  ;;  %v705_v45 = vmax.f32 %v607_v37, 0.0 }
 0x134   :  { %v609_v40 = vpop.f32.mrf.mxu0  ;;  %1787 = vmatmul.mubr.bf16.gmra.mxu1 %v742_v35 }
 0x135   :  { %v610_v41 = vadd.f32 %v2057_v43, %v609_v40  ;;  %v708_v42 = vmax.f32 %v618_v38, 0.0 }
 0x136   :  { %v1716_v44 = vpop.f32.mrf.mxu0 }
 0x137   :  { %v706_v46 = vmax.f32 %v610_v41, 0.0  ;;  %v744_v50 = vpack.c.bf16 %v708_v42, %v707_v47  ;;  %v631_v54 = vadd.f32 %v1716_v44, %v2057_v43 }
 0x138   :  { %v622_v48 = vpop.f32.mrf.mxu0 }
 0x139   :  { %v743_v49 = vpack.c.bf16 %v706_v46, %v705_v45  ;;  %v623_v52 = vadd.f32 %v2057_v43, %v622_v48  ;;  %v711_v61 = vmax.f32 %v631_v54, 0.0 }
 0x13a   :  { %v1717_v51 = vpop.f32.mrf.mxu0 }
 0x13b   :  { %v634_v53 = vadd.f32 %v1717_v51, %v2057_v43  ;;  %1790 = vmatprep.mubr.bf16.mxu1 %v743_v49  ;;  %v709_v59 = vmax.f32 %v623_v52, 0.0 }
 0x13c   :  { %v625_v55 = vpop.f32.mrf.mxu0  ;;  %1791 = vmatmul.mubr.bf16.gmra.mxu1 %v744_v50 }
 0x13d   :  { %v626_v56 = vadd.f32 %v2057_v43, %v625_v55  ;;  %v712_v57 = vmax.f32 %v634_v53, 0.0 }
 0x13e   :  { %v1720_v58 = vpop.f32.mrf.mxu0 }
 0x13f   :  { %v710_v60 = vmax.f32 %v626_v56, 0.0  ;;  %v746_v0 = vpack.c.bf16 %v712_v57, %v711_v61  ;;  %v647_v4 = vadd.f32 %v1720_v58, %v2057_v43 }
 0x140   :  { %v638_v62 = vpop.f32.mrf.mxu0 }
 0x141   :  { %v745_v63 = vpack.c.bf16 %v710_v60, %v709_v59  ;;  %v639_v2 = vadd.f32 %v2057_v43, %v638_v62  ;;  %v715_v10 = vmax.f32 %v647_v4, 0.0 }
 0x142   :  { %v1721_v1 = vpop.f32.mrf.mxu0 }
 0x143   :  { %v650_v3 = vadd.f32 %v1721_v1, %v2057_v43  ;;  %1794 = vmatprep.mubr.bf16.mxu1 %v745_v63  ;;  %v713_v8 = vmax.f32 %v639_v2, 0.0 }
 0x144   :  { %v641_v5 = vpop.f32.mrf.mxu0  ;;  %1795 = vmatmul.mubr.bf16.gmra.mxu1 %v746_v0 }
 0x145   :  { %v642_v6 = vadd.f32 %v2057_v43, %v641_v5  ;;  %v716_v7 = vmax.f32 %v650_v3, 0.0  ;;  %v2132_v43 = vld [vmem:[%s2591_s5] ss:$0 sm:$0xff] }
 0x147   :  { %v714_v9 = vmax.f32 %v642_v6, 0.0  ;;  %v748_v12 = vpack.c.bf16 %v716_v7, %v715_v10 }
 0x149   :  { %v747_v11 = vpack.c.bf16 %v714_v9, %v713_v8 }
 0x14b   :  { %1798 = vmatprep.mubr.bf16.mxu1 %v747_v11 }
 0x14c   :  { %1799 = vmatmul.mubr.bf16.gmra.mxu1 %v748_v12 }
 0x194   :  { %v1740_v14 = vpop.f32.mrf.mxu0 }
 0x195   :  { %v863_v15 = vadd.f32 %v1740_v14, %v2126_v13 }
 0x196   :  { %v854_v16 = vpop.f32.mrf.mxu0 }
 0x197   :  { %v1111_v17 = vmax.f32 %v863_v15, 0.0  ;;  %v855_v18 = vadd.f32 %v2126_v13, %v854_v16 }
 0x198   :  { %v1741_v19 = vpop.f32.mrf.mxu0 }
 0x199   :  { %v1109_v20 = vmax.f32 %v855_v18, 0.0  ;;  %v866_v21 = vadd.f32 %v1741_v19, %v2126_v13  ;;  %v1182_v22 = vmul.f32 %v2132_v43, %v1111_v17 }
 0x19a   :  { %v857_v23 = vpop.f32.mrf.mxu0 }
 0x19b   :  { %v1112_v24 = vmax.f32 %v866_v21, 0.0  ;;  %v858_v25 = vadd.f32 %v2126_v13, %v857_v23  ;;  %1248 = vadd.xlane.f32.xlu1 %v1182_v22  ;;  %v1180_v26 = vmul.f32 %v2132_v43, %v1109_v20 }
 0x19c   :  { %v1744_v27 = vpop.f32.mrf.mxu1 }
 0x19d   :  { %v1110_v28 = vmax.f32 %v858_v25, 0.0  ;;  %v879_v29 = vadd.f32 %v1744_v27, %v2126_v13  ;;  %1244 = vadd.xlane.f32.xlu0 %v1180_v26  ;;  %v1183_v30 = vmul.f32 %v2132_v43, %v1112_v24 }
 0x19e   :  { %v870_v31 = vpop.f32.mrf.mxu1 }
 0x19f   :  { %v1115_v32 = vmax.f32 %v879_v29, 0.0  ;;  %v871_v33 = vadd.f32 %v2126_v13, %v870_v31  ;;  %1250 = vadd.xlane.f32.xlu1 %v1183_v30  ;;  %v1181_v34 = vmul.f32 %v2132_v43, %v1110_v28 }
 0x1a0   :  { %v1745_v35 = vpop.f32.mrf.mxu1 }
 0x1a1   :  { %v882_v36 = vadd.f32 %v1745_v35, %v2126_v13  ;;  %1246 = vadd.xlane.f32.xlu0 %v1181_v34  ;;  %v1113_v38 = vmax.f32 %v871_v33, 0.0  ;;  %v1186_v41 = vmul.f32 %v2132_v43, %v1115_v32 }
 0x1a2   :  { %v873_v37 = vpop.f32.mrf.mxu1 }
 0x1a3   :  { %v1116_v39 = vmax.f32 %v882_v36, 0.0  ;;  %v874_v40 = vadd.f32 %v2126_v13, %v873_v37  ;;  %v1184_v50 = vmul.f32 %v2132_v43, %v1113_v38 }
 0x1a4   :  { %v1748_v42 = vpop.f32.mrf.mxu1 }
 0x1a5   :  { %v1114_v44 = vmax.f32 %v874_v40, 0.0  ;;  %v895_v45 = vadd.f32 %v1748_v42, %v2126_v13  ;;  %1256 = vadd.xlane.f32.xlu0 %v1186_v41  ;;  %v1187_v46 = vmul.f32 %v2132_v43, %v1116_v39 }
 0x1a6   :  { %v886_v47 = vpop.f32.mrf.mxu1 }
 0x1a7   :  { %v1119_v48 = vmax.f32 %v895_v45, 0.0  ;;  %v887_v49 = vadd.f32 %v2126_v13, %v886_v47  ;;  %1258 = vadd.xlane.f32.xlu1 %v1187_v46  ;;  %v1185_v53 = vmul.f32 %v2132_v43, %v1114_v44 }
 0x1a8   :  { %v1749_v51 = vpop.f32.mrf.mxu1 }
 0x1a9   :  { %v898_v52 = vadd.f32 %v1749_v51, %v2126_v13  ;;  %1252 = vadd.xlane.f32.xlu0 %v1184_v50  ;;  %v1117_v55 = vmax.f32 %v887_v49, 0.0  ;;  %v1190_v58 = vmul.f32 %v2132_v43, %v1119_v48 }
 0x1aa   :  { %v889_v54 = vpop.f32.mrf.mxu1 }
 0x1ab   :  { %v1120_v56 = vmax.f32 %v898_v52, 0.0  ;;  %v890_v57 = vadd.f32 %v2126_v13, %v889_v54  ;;  %1254 = vadd.xlane.f32.xlu1 %v1185_v53  ;;  %v1188_v2 = vmul.f32 %v2132_v43, %v1117_v55 }
 0x1ac   :  { %v1752_v59 = vpop.f32.mrf.mxu1 }
 0x1ad   :  { %v1118_v60 = vmax.f32 %v890_v57, 0.0  ;;  %v911_v61 = vadd.f32 %v1752_v59, %v2126_v13  ;;  %1264 = vadd.xlane.f32.xlu0 %v1190_v58  ;;  %v1191_v62 = vmul.f32 %v2132_v43, %v1120_v56 }
 0x1ae   :  { %v902_v63 = vpop.f32.mrf.mxu1 }
 0x1af   :  { %v1123_v0 = vmax.f32 %v911_v61, 0.0  ;;  %v903_v1 = vadd.f32 %v2126_v13, %v902_v63  ;;  %1266 = vadd.xlane.f32.xlu1 %v1191_v62  ;;  %v1189_v5 = vmul.f32 %v2132_v43, %v1118_v60 }
 0x1b0   :  { %v1753_v3 = vpop.f32.mrf.mxu1 }
 0x1b1   :  { %v914_v4 = vadd.f32 %v1753_v3, %v2126_v13  ;;  %1260 = vadd.xlane.f32.xlu0 %v1188_v2  ;;  %v1121_v7 = vmax.f32 %v903_v1, 0.0  ;;  %v1194_v10 = vmul.f32 %v2132_v43, %v1123_v0 }
 0x1b2   :  { %v905_v6 = vpop.f32.mrf.mxu1 }
 0x1b3   :  { %v1124_v8 = vmax.f32 %v914_v4, 0.0  ;;  %v906_v9 = vadd.f32 %v2126_v13, %v905_v6  ;;  %1262 = vadd.xlane.f32.xlu1 %v1189_v5  ;;  %v1192_v19 = vmul.f32 %v2132_v43, %v1121_v7 }
 0x1b4   :  { %v1756_v11 = vpop.f32.mrf.mxu1 }
 0x1b5   :  { %v1122_v12 = vmax.f32 %v906_v9, 0.0  ;;  %v927_v14 = vadd.f32 %v1756_v11, %v2126_v13  ;;  %1272 = vadd.xlane.f32.xlu0 %v1194_v10  ;;  %v1195_v15 = vmul.f32 %v2132_v43, %v1124_v8 }
 0x1b6   :  { %v918_v16 = vpop.f32.mrf.mxu1 }
 0x1b7   :  { %v1127_v17 = vmax.f32 %v927_v14, 0.0  ;;  %v919_v18 = vadd.f32 %v2126_v13, %v918_v16  ;;  %1274 = vadd.xlane.f32.xlu1 %v1195_v15  ;;  %v1193_v22 = vmul.f32 %v2132_v43, %v1122_v12 }
 0x1b8   :  { %v1757_v20 = vpop.f32.mrf.mxu1 }
 0x1b9   :  { %v930_v21 = vadd.f32 %v1757_v20, %v2126_v13  ;;  %1268 = vadd.xlane.f32.xlu0 %v1192_v19  ;;  %v1125_v24 = vmax.f32 %v919_v18, 0.0  ;;  %v1198_v27 = vmul.f32 %v2132_v43, %v1127_v17 }
 0x1ba   :  { %v921_v23 = vpop.f32.mrf.mxu1 }
 0x1bb   :  { %v1128_v25 = vmax.f32 %v930_v21, 0.0  ;;  %v922_v26 = vadd.f32 %v2126_v13, %v921_v23  ;;  %1270 = vadd.xlane.f32.xlu1 %v1193_v22  ;;  %v1196_v35 = vmul.f32 %v2132_v43, %v1125_v24 }
 0x1bc   :  { %v1760_v28 = vpop.f32.mrf.mxu1 }
 0x1bd   :  { %v1126_v29 = vmax.f32 %v922_v26, 0.0  ;;  %v943_v30 = vadd.f32 %v1760_v28, %v2126_v13  ;;  %1280 = vadd.xlane.f32.xlu0 %v1198_v27  ;;  %v1199_v31 = vmul.f32 %v2132_v43, %v1128_v25 }
 0x1be   :  { %v934_v32 = vpop.f32.mrf.mxu1 }
 0x1bf   :  { %v1131_v33 = vmax.f32 %v943_v30, 0.0  ;;  %v935_v34 = vadd.f32 %v2126_v13, %v934_v32  ;;  %1282 = vadd.xlane.f32.xlu1 %v1199_v31  ;;  %v1197_v38 = vmul.f32 %v2132_v43, %v1126_v29 }
 0x1c0   :  { %v1761_v36 = vpop.f32.mrf.mxu1 }
 0x1c1   :  { %v946_v37 = vadd.f32 %v1761_v36, %v2126_v13  ;;  %1276 = vadd.xlane.f32.xlu0 %v1196_v35  ;;  %v1129_v40 = vmax.f32 %v935_v34, 0.0  ;;  %v1202_v44 = vmul.f32 %v2132_v43, %v1131_v33 }
 0x1c2   :  { %v937_v39 = vpop.f32.mrf.mxu1 }
 0x1c3   :  { %v1132_v41 = vmax.f32 %v946_v37, 0.0  ;;  %v938_v42 = vadd.f32 %v2126_v13, %v937_v39  ;;  %1278 = vadd.xlane.f32.xlu1 %v1197_v38  ;;  %v1200_v52 = vmul.f32 %v2132_v43, %v1129_v40 }
 0x1c4   :  { %v1764_v45 = vpop.f32.mrf.mxu1 }
 0x1c5   :  { %v1130_v46 = vmax.f32 %v938_v42, 0.0  ;;  %v959_v47 = vadd.f32 %v1764_v45, %v2126_v13  ;;  %1288 = vadd.xlane.f32.xlu0 %v1202_v44  ;;  %v1203_v48 = vmul.f32 %v2132_v43, %v1132_v41 }
 0x1c6   :  { %v950_v49 = vpop.f32.mrf.mxu1 }
 0x1c7   :  { %v1135_v50 = vmax.f32 %v959_v47, 0.0  ;;  %v951_v51 = vadd.f32 %v2126_v13, %v950_v49  ;;  %1290 = vadd.xlane.f32.xlu1 %v1203_v48  ;;  %v1201_v55 = vmul.f32 %v2132_v43, %v1130_v46 }
 0x1c8   :  { %v1765_v53 = vpop.f32.mrf.mxu1 }
 0x1c9   :  { %v962_v54 = vadd.f32 %v1765_v53, %v2126_v13  ;;  %1284 = vadd.xlane.f32.xlu0 %v1200_v52  ;;  %v1133_v57 = vmax.f32 %v951_v51, 0.0  ;;  %v1206_v60 = vmul.f32 %v2132_v43, %v1135_v50 }
 0x1ca   :  { %v953_v56 = vpop.f32.mrf.mxu1 }
 0x1cb   :  { %v1136_v58 = vmax.f32 %v962_v54, 0.0  ;;  %v954_v59 = vadd.f32 %v2126_v13, %v953_v56  ;;  %1286 = vadd.xlane.f32.xlu1 %v1201_v55  ;;  %v1204_v4 = vmul.f32 %v2132_v43, %v1133_v57 }
 0x1cc   :  { %v1768_v61 = vpop.f32.mrf.mxu1 }
 0x1cd   :  { %v1134_v62 = vmax.f32 %v954_v59, 0.0  ;;  %v975_v63 = vadd.f32 %v1768_v61, %v2126_v13  ;;  %1296 = vadd.xlane.f32.xlu0 %v1206_v60  ;;  %v1207_v0 = vmul.f32 %v2132_v43, %v1136_v58 }
 0x1ce   :  { %v966_v1 = vpop.f32.mrf.mxu1 }
 0x1cf   :  { %v1139_v2 = vmax.f32 %v975_v63, 0.0  ;;  %v967_v3 = vadd.f32 %v2126_v13, %v966_v1  ;;  %1298 = vadd.xlane.f32.xlu1 %v1207_v0  ;;  %v1205_v7 = vmul.f32 %v2132_v43, %v1134_v62 }
 0x1d0   :  { %v1769_v5 = vpop.f32.mrf.mxu1 }
 0x1d1   :  { %v978_v6 = vadd.f32 %v1769_v5, %v2126_v13  ;;  %1292 = vadd.xlane.f32.xlu0 %v1204_v4  ;;  %v1137_v9 = vmax.f32 %v967_v3, 0.0  ;;  %v1210_v12 = vmul.f32 %v2132_v43, %v1139_v2 }
 0x1d2   :  { %v969_v8 = vpop.f32.mrf.mxu1 }
 0x1d3   :  { %v1140_v10 = vmax.f32 %v978_v6, 0.0  ;;  %v970_v11 = vadd.f32 %v2126_v13, %v969_v8  ;;  %1294 = vadd.xlane.f32.xlu1 %v1205_v7  ;;  %v1208_v21 = vmul.f32 %v2132_v43, %v1137_v9 }
 0x1d4   :  { %v1772_v14 = vpop.f32.mrf.mxu1 }
 0x1d5   :  { %v1138_v15 = vmax.f32 %v970_v11, 0.0  ;;  %v991_v16 = vadd.f32 %v1772_v14, %v2126_v13  ;;  %1304 = vadd.xlane.f32.xlu0 %v1210_v12  ;;  %v1211_v17 = vmul.f32 %v2132_v43, %v1140_v10 }
 0x1d6   :  { %v982_v18 = vpop.f32.mrf.mxu1 }
 0x1d7   :  { %v1143_v19 = vmax.f32 %v991_v16, 0.0  ;;  %v983_v20 = vadd.f32 %v2126_v13, %v982_v18  ;;  %1306 = vadd.xlane.f32.xlu1 %v1211_v17  ;;  %v1209_v24 = vmul.f32 %v2132_v43, %v1138_v15 }
 0x1d8   :  { %v1773_v22 = vpop.f32.mrf.mxu1 }
 0x1d9   :  { %v994_v23 = vadd.f32 %v1773_v22, %v2126_v13  ;;  %1300 = vadd.xlane.f32.xlu0 %v1208_v21  ;;  %v1141_v26 = vmax.f32 %v983_v20, 0.0  ;;  %v1214_v29 = vmul.f32 %v2132_v43, %v1143_v19 }
 0x1da   :  { %v985_v25 = vpop.f32.mrf.mxu1 }
 0x1db   :  { %v1144_v27 = vmax.f32 %v994_v23, 0.0  ;;  %v986_v28 = vadd.f32 %v2126_v13, %v985_v25  ;;  %1302 = vadd.xlane.f32.xlu1 %v1209_v24  ;;  %v1212_v37 = vmul.f32 %v2132_v43, %v1141_v26 }
 0x1dc   :  { %v1776_v30 = vpop.f32.mrf.mxu1 }
 0x1dd   :  { %v1142_v31 = vmax.f32 %v986_v28, 0.0  ;;  %v1007_v32 = vadd.f32 %v1776_v30, %v2126_v13  ;;  %1312 = vadd.xlane.f32.xlu0 %v1214_v29  ;;  %v1215_v33 = vmul.f32 %v2132_v43, %v1144_v27 }
 0x1de   :  { %v998_v34 = vpop.f32.mrf.mxu1 }
 0x1df   :  { %v1147_v35 = vmax.f32 %v1007_v32, 0.0  ;;  %v999_v36 = vadd.f32 %v2126_v13, %v998_v34  ;;  %1314 = vadd.xlane.f32.xlu1 %v1215_v33  ;;  %v1213_v40 = vmul.f32 %v2132_v43, %v1142_v31 }
 0x1e0   :  { %v1777_v38 = vpop.f32.mrf.mxu1 }
 0x1e1   :  { %v1010_v39 = vadd.f32 %v1777_v38, %v2126_v13  ;;  %1308 = vadd.xlane.f32.xlu0 %v1212_v37  ;;  %v1145_v42 = vmax.f32 %v999_v36, 0.0  ;;  %v1218_v46 = vmul.f32 %v2132_v43, %v1147_v35 }
 0x1e2   :  { %v1001_v41 = vpop.f32.mrf.mxu1 }
 0x1e3   :  { %v1148_v44 = vmax.f32 %v1010_v39, 0.0  ;;  %v1002_v45 = vadd.f32 %v2126_v13, %v1001_v41  ;;  %1310 = vadd.xlane.f32.xlu1 %v1213_v40  ;;  %v1216_v54 = vmul.f32 %v2132_v43, %v1145_v42 }
 0x1e4   :  { %v1780_v47 = vpop.f32.mrf.mxu1 }
 0x1e5   :  { %v1146_v48 = vmax.f32 %v1002_v45, 0.0  ;;  %v1023_v49 = vadd.f32 %v1780_v47, %v2126_v13  ;;  %1320 = vadd.xlane.f32.xlu0 %v1218_v46  ;;  %v1219_v50 = vmul.f32 %v2132_v43, %v1148_v44 }
 0x1e6   :  { %v1014_v51 = vpop.f32.mrf.mxu1 }
 0x1e7   :  { %v1151_v52 = vmax.f32 %v1023_v49, 0.0  ;;  %v1015_v53 = vadd.f32 %v2126_v13, %v1014_v51  ;;  %1322 = vadd.xlane.f32.xlu1 %v1219_v50  ;;  %v1217_v57 = vmul.f32 %v2132_v43, %v1146_v48 }
 0x1e8   :  { %v1781_v55 = vpop.f32.mrf.mxu1 }
 0x1e9   :  { %v1026_v56 = vadd.f32 %v1781_v55, %v2126_v13  ;;  %1316 = vadd.xlane.f32.xlu0 %v1216_v54  ;;  %v1149_v59 = vmax.f32 %v1015_v53, 0.0  ;;  %v1222_v62 = vmul.f32 %v2132_v43, %v1151_v52 }
 0x1ea   :  { %v1017_v58 = vpop.f32.mrf.mxu1 }
 0x1eb   :  { %v1152_v60 = vmax.f32 %v1026_v56, 0.0  ;;  %v1018_v61 = vadd.f32 %v2126_v13, %v1017_v58  ;;  %1318 = vadd.xlane.f32.xlu1 %v1217_v57  ;;  %v1220_v6 = vmul.f32 %v2132_v43, %v1149_v59 }
 0x1ec   :  { %v1784_v63 = vpop.f32.mrf.mxu1 }
 0x1ed   :  { %v1150_v0 = vmax.f32 %v1018_v61, 0.0  ;;  %v1039_v1 = vadd.f32 %v1784_v63, %v2126_v13  ;;  %1328 = vadd.xlane.f32.xlu0 %v1222_v62  ;;  %v1223_v2 = vmul.f32 %v2132_v43, %v1152_v60 }
 0x1ee   :  { %v1030_v3 = vpop.f32.mrf.mxu1 }
 0x1ef   :  { %v1155_v4 = vmax.f32 %v1039_v1, 0.0  ;;  %v1031_v5 = vadd.f32 %v2126_v13, %v1030_v3  ;;  %1330 = vadd.xlane.f32.xlu1 %v1223_v2  ;;  %v1221_v9 = vmul.f32 %v2132_v43, %v1150_v0 }
 0x1f0   :  { %v1785_v7 = vpop.f32.mrf.mxu1 }
 0x1f1   :  { %v1042_v8 = vadd.f32 %v1785_v7, %v2126_v13  ;;  %1324 = vadd.xlane.f32.xlu0 %v1220_v6  ;;  %v1153_v11 = vmax.f32 %v1031_v5, 0.0  ;;  %v1226_v15 = vmul.f32 %v2132_v43, %v1155_v4 }
 0x1f2   :  { %v1033_v10 = vpop.f32.mrf.mxu1 }
 0x1f3   :  { %v1156_v12 = vmax.f32 %v1042_v8, 0.0  ;;  %v1034_v14 = vadd.f32 %v2126_v13, %v1033_v10  ;;  %1326 = vadd.xlane.f32.xlu1 %v1221_v9  ;;  %v1224_v23 = vmul.f32 %v2132_v43, %v1153_v11 }
 0x1f4   :  { %v1788_v16 = vpop.f32.mrf.mxu1 }
 0x1f5   :  { %v1154_v17 = vmax.f32 %v1034_v14, 0.0  ;;  %v1055_v18 = vadd.f32 %v1788_v16, %v2126_v13  ;;  %1336 = vadd.xlane.f32.xlu0 %v1226_v15  ;;  %v1227_v19 = vmul.f32 %v2132_v43, %v1156_v12 }
 0x1f6   :  { %v1046_v20 = vpop.f32.mrf.mxu1 }
 0x1f7   :  { %v1159_v21 = vmax.f32 %v1055_v18, 0.0  ;;  %v1047_v22 = vadd.f32 %v2126_v13, %v1046_v20  ;;  %1338 = vadd.xlane.f32.xlu1 %v1227_v19  ;;  %v1225_v26 = vmul.f32 %v2132_v43, %v1154_v17 }
 0x1f8   :  { %v1789_v24 = vpop.f32.mrf.mxu1 }
 0x1f9   :  { %v1058_v25 = vadd.f32 %v1789_v24, %v2126_v13  ;;  %1332 = vadd.xlane.f32.xlu0 %v1224_v23  ;;  %v1157_v28 = vmax.f32 %v1047_v22, 0.0  ;;  %v1230_v31 = vmul.f32 %v2132_v43, %v1159_v21  ;;  %v2264_v22 = vstv %s2592_s6 }
 0x1fa   :  { %v1049_v27 = vpop.f32.mrf.mxu1 }
 0x1fb   :  { %v1160_v29 = vmax.f32 %v1058_v25, 0.0  ;;  %v1050_v30 = vadd.f32 %v2126_v13, %v1049_v27  ;;  %1334 = vadd.xlane.f32.xlu1 %v1225_v26  ;;  %v1228_v39 = vmul.f32 %v2132_v43, %v1157_v28 }
 0x1fc   :  { %v1792_v32 = vpop.f32.mrf.mxu1 }
 0x1fd   :  { %v1158_v33 = vmax.f32 %v1050_v30, 0.0  ;;  %v1071_v34 = vadd.f32 %v1792_v32, %v2126_v13  ;;  %1344 = vadd.xlane.f32.xlu0 %v1230_v31  ;;  %v1231_v35 = vmul.f32 %v2132_v43, %v1160_v29 }
 0x1fe   :  { %v1062_v36 = vpop.f32.mrf.mxu1 }
 0x1ff   :  { %v1163_v37 = vmax.f32 %v1071_v34, 0.0  ;;  %v1063_v38 = vadd.f32 %v2126_v13, %v1062_v36  ;;  %1346 = vadd.xlane.f32.xlu1 %v1231_v35  ;;  %v1229_v42 = vmul.f32 %v2132_v43, %v1158_v33 }
 0x200   :  { %v1793_v40 = vpop.f32.mrf.mxu1 }
 0x201   :  { %v1074_v41 = vadd.f32 %v1793_v40, %v2126_v13  ;;  %1340 = vadd.xlane.f32.xlu0 %v1228_v39  ;;  %v1161_v45 = vmax.f32 %v1063_v38, 0.0  ;;  %v1234_v48 = vmul.f32 %v2132_v43, %v1163_v37 }
 0x202   :  { %v1065_v44 = vpop.f32.mrf.mxu1 }
 0x203   :  { %v1164_v46 = vmax.f32 %v1074_v41, 0.0  ;;  %v1066_v47 = vadd.f32 %v2126_v13, %v1065_v44  ;;  %1342 = vadd.xlane.f32.xlu1 %v1229_v42  ;;  %v1232_v56 = vmul.f32 %v2132_v43, %v1161_v45 }
 0x204   :  { %v1796_v49 = vpop.f32.mrf.mxu1 }
 0x205   :  { %v1162_v50 = vmax.f32 %v1066_v47, 0.0  ;;  %v1087_v51 = vadd.f32 %v1796_v49, %v2126_v13  ;;  %1352 = vadd.xlane.f32.xlu0 %v1234_v48  ;;  %v1235_v52 = vmul.f32 %v2132_v43, %v1164_v46 }
 0x206   :  { %v1078_v53 = vpop.f32.mrf.mxu1 }
 0x207   :  { %v1167_v54 = vmax.f32 %v1087_v51, 0.0  ;;  %v1079_v55 = vadd.f32 %v2126_v13, %v1078_v53  ;;  %1354 = vadd.xlane.f32.xlu1 %v1235_v52  ;;  %v1233_v59 = vmul.f32 %v2132_v43, %v1162_v50 }
 0x208   :  { %v1797_v57 = vpop.f32.mrf.mxu1 }
 0x209   :  { %v1090_v58 = vadd.f32 %v1797_v57, %v2126_v13  ;;  %1348 = vadd.xlane.f32.xlu0 %v1232_v56  ;;  %v1165_v61 = vmax.f32 %v1079_v55, 0.0  ;;  %v1238_v0 = vmul.f32 %v2132_v43, %v1167_v54 }
 0x20a   :  { %v1081_v60 = vpop.f32.mrf.mxu1 }
 0x20b   :  { %v1168_v62 = vmax.f32 %v1090_v58, 0.0  ;;  %v1082_v63 = vadd.f32 %v2126_v13, %v1081_v60  ;;  %1350 = vadd.xlane.f32.xlu1 %v1233_v59  ;;  %v1236_v7 = vmul.f32 %v2132_v43, %v1165_v61 }
 0x20c   :  { %v1800_v1 = vpop.f32.mrf.mxu1 }
 0x20d   :  { %v1166_v2 = vmax.f32 %v1082_v63, 0.0  ;;  %1360 = vadd.xlane.f32.xlu0 %v1238_v0  ;;  %v1239_v3 = vmul.f32 %v2132_v43, %v1168_v62  ;;  %v1103_v5 = vadd.f32 %v1800_v1, %v2126_v13 }
 0x20e   :  { %v1094_v4 = vpop.f32.mrf.mxu1 }
 0x20f   :  { %v1095_v6 = vadd.f32 %v2126_v13, %v1094_v4  ;;  %1362 = vadd.xlane.f32.xlu1 %v1239_v3  ;;  %v1237_v10 = vmul.f32 %v2132_v43, %v1166_v2  ;;  %v1171_v12 = vmax.f32 %v1103_v5, 0.0 }
 0x210   :  { %v1801_v8 = vpop.f32.mrf.mxu1 }
 0x211   :  { %v1169_v9 = vmax.f32 %v1095_v6, 0.0  ;;  %1356 = vadd.xlane.f32.xlu0 %v1236_v7  ;;  %v1106_v14 = vadd.f32 %v1801_v8, %v2126_v13  ;;  %v1242_v20 = vmul.f32 %v2132_v43, %v1171_v12 }
 0x212   :  { %v1097_v11 = vpop.f32.mrf.mxu1 }
 0x213   :  { %v1098_v15 = vadd.f32 %v2126_v13, %v1097_v11  ;;  %1358 = vadd.xlane.f32.xlu1 %v1237_v10  ;;  %v1240_v16 = vmul.f32 %v2132_v43, %v1169_v9  ;;  %v1172_v18 = vmax.f32 %v1106_v14, 0.0 }
 0x215   :  { %v1170_v17 = vmax.f32 %v1098_v15, 0.0  ;;  %1364 = vadd.xlane.f32.xlu0 %v1240_v16  ;;  %v1243_v21 = vmul.f32 %v2132_v43, %v1172_v18 }
 0x217   :  { %v1241_v19 = vmul.f32 %v2132_v43, %v1170_v17 }
 0x219   :  { %1366 = vadd.xlane.f32.xlu1 %v1241_v19  ;;  %1368 = vadd.xlane.f32.xlu0 %v1242_v20 }
 0x21d   :  { %1370 = vadd.xlane.f32.xlu1 %v1243_v21 }
 0x224   :  { %v1249_v13 = vpop.xlane.xlu1 %1248 }
 0x225   :  { %v1376_v23 = vadd.f32 %v2264_v22, %v1249_v13 }
 0x226   :  { %v1245_v24 = vpop.xlane.xlu0 %1244 }
 0x227   :  { %1441 = vst.msk [vmem:[%s2593_s7 + $0x10] sm:$0xff] %vm1438_vm1, %v1376_v23  ;;  %v1374_v25 = vadd.f32 %v2264_v22, %v1245_v24 }
 0x228   :  { %v1251_v26 = vpop.xlane.xlu1 %1250 }
 0x229   :  { %1439 = vst.msk [vmem:[%s2593_s7] sm:$0xff] %vm1438_vm1, %v1374_v25  ;;  %v1377_v43 = vadd.f32 %v2264_v22, %v1251_v26 }
 0x22a   :  { %v1247_v27 = vpop.xlane.xlu0 %1246 }
 0x22b   :  { %1442 = vst.msk [vmem:[%s2593_s7 + $0x18] sm:$0xff] %vm1438_vm1, %v1377_v43  ;;  %v1375_v28 = vadd.f32 %v2264_v22, %v1247_v27 }
 0x22d   :  { %1440 = vst.msk [vmem:[%s2593_s7 + $0x8] sm:$0xff] %vm1438_vm1, %v1375_v28 }
 0x22e   :  { %v1257_v29 = vpop.xlane.xlu0 %1256 }
 0x22f   :  { %v1380_v30 = vadd.f32 %v2264_v22, %v1257_v29 }
 0x230   :  { %v1259_v31 = vpop.xlane.xlu1 %1258 }
 0x231   :  { %1445 = vst.msk [vmem:[%s2593_s7 + $0x30] sm:$0xff] %vm1438_vm1, %v1380_v30  ;;  %v1381_v32 = vadd.f32 %v2264_v22, %v1259_v31 }
 0x232   :  { %v1253_v33 = vpop.xlane.xlu0 %1252 }
 0x233   :  { %1446 = vst.msk [vmem:[%s2593_s7 + $0x38] sm:$0xff] %vm1438_vm1, %v1381_v32  ;;  %v1378_v34 = vadd.f32 %v2264_v22, %v1253_v33 }
 0x234   :  { %v1255_v35 = vpop.xlane.xlu1 %1254 }
 0x235   :  { %1443 = vst.msk [vmem:[%s2593_s7 + $0x20] sm:$0xff] %vm1438_vm1, %v1378_v34  ;;  %v1379_v36 = vadd.f32 %v2264_v22, %v1255_v35 }
 0x236   :  { %v1265_v37 = vpop.xlane.xlu0 %1264 }
 0x237   :  { %1444 = vst.msk [vmem:[%s2593_s7 + $0x28] sm:$0xff] %vm1438_vm1, %v1379_v36  ;;  %v1384_v38 = vadd.f32 %v2264_v22, %v1265_v37 }
 0x238   :  { %v1267_v39 = vpop.xlane.xlu1 %1266 }
 0x239   :  { %1449 = vst.msk [vmem:[%s2593_s7 + $0x50] sm:$0xff] %vm1438_vm1, %v1384_v38  ;;  %v1385_v40 = vadd.f32 %v2264_v22, %v1267_v39 }
 0x23a   :  { %v1261_v41 = vpop.xlane.xlu0 %1260 }
 0x23b   :  { %1450 = vst.msk [vmem:[%s2593_s7 + $0x58] sm:$0xff] %vm1438_vm1, %v1385_v40  ;;  %v1382_v42 = vadd.f32 %v2264_v22, %v1261_v41 }
 0x23c   :  { %v1263_v44 = vpop.xlane.xlu1 %1262 }
 0x23d   :  { %1447 = vst.msk [vmem:[%s2593_s7 + $0x40] sm:$0xff] %vm1438_vm1, %v1382_v42  ;;  %v1383_v45 = vadd.f32 %v2264_v22, %v1263_v44 }
 0x23e   :  { %v1273_v46 = vpop.xlane.xlu0 %1272 }
 0x23f   :  { %1448 = vst.msk [vmem:[%s2593_s7 + $0x48] sm:$0xff] %vm1438_vm1, %v1383_v45  ;;  %v1388_v47 = vadd.f32 %v2264_v22, %v1273_v46 }
 0x240   :  { %v1275_v48 = vpop.xlane.xlu1 %1274 }
 0x241   :  { %1453 = vst.msk [vmem:[%s2593_s7 + $0x70] sm:$0xff] %vm1438_vm1, %v1388_v47  ;;  %v1389_v49 = vadd.f32 %v2264_v22, %v1275_v48 }
 0x242   :  { %v1269_v50 = vpop.xlane.xlu0 %1268 }
 0x243   :  { %1454 = vst.msk [vmem:[%s2593_s7 + $0x78] sm:$0xff] %vm1438_vm1, %v1389_v49  ;;  %v1386_v51 = vadd.f32 %v2264_v22, %v1269_v50 }
 0x244   :  { %v1271_v52 = vpop.xlane.xlu1 %1270 }
 0x245   :  { %1451 = vst.msk [vmem:[%s2593_s7 + $0x60] sm:$0xff] %vm1438_vm1, %v1386_v51  ;;  %v1387_v53 = vadd.f32 %v2264_v22, %v1271_v52 }
 0x246   :  { %v1281_v54 = vpop.xlane.xlu0 %1280 }
 0x247   :  { %1452 = vst.msk [vmem:[%s2593_s7 + $0x68] sm:$0xff] %vm1438_vm1, %v1387_v53  ;;  %v1392_v55 = vadd.f32 %v2264_v22, %v1281_v54 }
 0x248   :  { %v1283_v56 = vpop.xlane.xlu1 %1282 }
 0x249   :  { %1457 = vst.msk [vmem:[%s2593_s7 + $0x90] sm:$0xff] %vm1438_vm1, %v1392_v55  ;;  %v1393_v57 = vadd.f32 %v2264_v22, %v1283_v56 }
 0x24a   :  { %v1277_v58 = vpop.xlane.xlu0 %1276 }
 0x24b   :  { %1458 = vst.msk [vmem:[%s2593_s7 + $0x98] sm:$0xff] %vm1438_vm1, %v1393_v57  ;;  %v1390_v59 = vadd.f32 %v2264_v22, %v1277_v58 }
 0x24c   :  { %v1279_v60 = vpop.xlane.xlu1 %1278 }
 0x24d   :  { %1455 = vst.msk [vmem:[%s2593_s7 + $0x80] sm:$0xff] %vm1438_vm1, %v1390_v59  ;;  %v1391_v61 = vadd.f32 %v2264_v22, %v1279_v60 }
 0x24e   :  { %v1289_v62 = vpop.xlane.xlu0 %1288 }
 0x24f   :  { %1456 = vst.msk [vmem:[%s2593_s7 + $0x88] sm:$0xff] %vm1438_vm1, %v1391_v61  ;;  %v1396_v63 = vadd.f32 %v2264_v22, %v1289_v62 }
 0x250   :  { %v1291_v0 = vpop.xlane.xlu1 %1290 }
 0x251   :  { %1461 = vst.msk [vmem:[%s2593_s7 + $0xb0] sm:$0xff] %vm1438_vm1, %v1396_v63  ;;  %v1397_v1 = vadd.f32 %v2264_v22, %v1291_v0 }
 0x252   :  { %v1285_v2 = vpop.xlane.xlu0 %1284 }
 0x253   :  { %1462 = vst.msk [vmem:[%s2593_s7 + $0xb8] sm:$0xff] %vm1438_vm1, %v1397_v1  ;;  %v1394_v3 = vadd.f32 %v2264_v22, %v1285_v2 }
 0x254   :  { %v1287_v4 = vpop.xlane.xlu1 %1286 }
 0x255   :  { %1459 = vst.msk [vmem:[%s2593_s7 + $0xa0] sm:$0xff] %vm1438_vm1, %v1394_v3  ;;  %v1395_v5 = vadd.f32 %v2264_v22, %v1287_v4 }
 0x256   :  { %v1297_v6 = vpop.xlane.xlu0 %1296 }
 0x257   :  { %1460 = vst.msk [vmem:[%s2593_s7 + $0xa8] sm:$0xff] %vm1438_vm1, %v1395_v5  ;;  %v1400_v7 = vadd.f32 %v2264_v22, %v1297_v6 }
 0x258   :  { %v1299_v8 = vpop.xlane.xlu1 %1298 }
 0x259   :  { %1465 = vst.msk [vmem:[%s2593_s7 + $0xd0] sm:$0xff] %vm1438_vm1, %v1400_v7  ;;  %v1401_v9 = vadd.f32 %v2264_v22, %v1299_v8 }
 0x25a   :  { %v1293_v10 = vpop.xlane.xlu0 %1292 }
 0x25b   :  { %1466 = vst.msk [vmem:[%s2593_s7 + $0xd8] sm:$0xff] %vm1438_vm1, %v1401_v9  ;;  %v1398_v11 = vadd.f32 %v2264_v22, %v1293_v10 }
 0x25c   :  { %v1295_v12 = vpop.xlane.xlu1 %1294 }
 0x25d   :  { %1463 = vst.msk [vmem:[%s2593_s7 + $0xc0] sm:$0xff] %vm1438_vm1, %v1398_v11  ;;  %v1399_v14 = vadd.f32 %v2264_v22, %v1295_v12 }
 0x25e   :  { %v1305_v15 = vpop.xlane.xlu0 %1304 }
 0x25f   :  { %1464 = vst.msk [vmem:[%s2593_s7 + $0xc8] sm:$0xff] %vm1438_vm1, %v1399_v14  ;;  %v1404_v16 = vadd.f32 %v2264_v22, %v1305_v15 }
 0x260   :  { %v1307_v17 = vpop.xlane.xlu1 %1306 }
 0x261   :  { %1469 = vst.msk [vmem:[%s2593_s7 + $0xf0] sm:$0xff] %vm1438_vm1, %v1404_v16  ;;  %v1405_v18 = vadd.f32 %v2264_v22, %v1307_v17 }
 0x262   :  { %v1301_v19 = vpop.xlane.xlu0 %1300 }
 0x263   :  { %1470 = vst.msk [vmem:[%s2593_s7 + $0xf8] sm:$0xff] %vm1438_vm1, %v1405_v18  ;;  %v1402_v20 = vadd.f32 %v2264_v22, %v1301_v19 }
 0x264   :  { %v1303_v21 = vpop.xlane.xlu1 %1302 }
 0x265   :  { %1467 = vst.msk [vmem:[%s2593_s7 + $0xe0] sm:$0xff] %vm1438_vm1, %v1402_v20  ;;  %v1403_v13 = vadd.f32 %v2264_v22, %v1303_v21 }
 0x266   :  { %v1313_v23 = vpop.xlane.xlu0 %1312 }
 0x267   :  { %1468 = vst.msk [vmem:[%s2593_s7 + $0xe8] sm:$0xff] %vm1438_vm1, %v1403_v13  ;;  %v1408_v24 = vadd.f32 %v2264_v22, %v1313_v23 }
 0x268   :  { %v1315_v25 = vpop.xlane.xlu1 %1314 }
 0x269   :  { %1473 = vst.msk [vmem:[%s2593_s7 + $0x110] sm:$0xff] %vm1438_vm1, %v1408_v24  ;;  %v1409_v26 = vadd.f32 %v2264_v22, %v1315_v25 }
 0x26a   :  { %v1309_v43 = vpop.xlane.xlu0 %1308 }
 0x26b   :  { %1474 = vst.msk [vmem:[%s2593_s7 + $0x118] sm:$0xff] %vm1438_vm1, %v1409_v26  ;;  %v1406_v27 = vadd.f32 %v2264_v22, %v1309_v43 }
 0x26c   :  { %v1311_v28 = vpop.xlane.xlu1 %1310 }
 0x26d   :  { %1471 = vst.msk [vmem:[%s2593_s7 + $0x100] sm:$0xff] %vm1438_vm1, %v1406_v27  ;;  %v1407_v29 = vadd.f32 %v2264_v22, %v1311_v28 }
 0x26e   :  { %v1321_v30 = vpop.xlane.xlu0 %1320 }
 0x26f   :  { %1472 = vst.msk [vmem:[%s2593_s7 + $0x108] sm:$0xff] %vm1438_vm1, %v1407_v29  ;;  %v1412_v31 = vadd.f32 %v2264_v22, %v1321_v30 }
 0x270   :  { %v1323_v32 = vpop.xlane.xlu1 %1322 }
 0x271   :  { %1477 = vst.msk [vmem:[%s2593_s7 + $0x130] sm:$0xff] %vm1438_vm1, %v1412_v31  ;;  %v1413_v33 = vadd.f32 %v2264_v22, %v1323_v32 }
 0x272   :  { %v1317_v34 = vpop.xlane.xlu0 %1316 }
 0x273   :  { %1478 = vst.msk [vmem:[%s2593_s7 + $0x138] sm:$0xff] %vm1438_vm1, %v1413_v33  ;;  %v1410_v35 = vadd.f32 %v2264_v22, %v1317_v34 }
 0x274   :  { %v1319_v36 = vpop.xlane.xlu1 %1318 }
 0x275   :  { %1475 = vst.msk [vmem:[%s2593_s7 + $0x120] sm:$0xff] %vm1438_vm1, %v1410_v35  ;;  %v1411_v37 = vadd.f32 %v2264_v22, %v1319_v36 }
 0x276   :  { %v1329_v38 = vpop.xlane.xlu0 %1328 }
 0x277   :  { %1476 = vst.msk [vmem:[%s2593_s7 + $0x128] sm:$0xff] %vm1438_vm1, %v1411_v37  ;;  %v1416_v39 = vadd.f32 %v2264_v22, %v1329_v38 }
 0x278   :  { %v1331_v40 = vpop.xlane.xlu1 %1330 }
 0x279   :  { %1481 = vst.msk [vmem:[%s2593_s7 + $0x150] sm:$0xff] %vm1438_vm1, %v1416_v39  ;;  %v1417_v41 = vadd.f32 %v2264_v22, %v1331_v40 }
 0x27a   :  { %v1325_v42 = vpop.xlane.xlu0 %1324 }
 0x27b   :  { %1482 = vst.msk [vmem:[%s2593_s7 + $0x158] sm:$0xff] %vm1438_vm1, %v1417_v41  ;;  %v1414_v44 = vadd.f32 %v2264_v22, %v1325_v42 }
 0x27c   :  { %v1327_v45 = vpop.xlane.xlu1 %1326 }
 0x27d   :  { %1479 = vst.msk [vmem:[%s2593_s7 + $0x140] sm:$0xff] %vm1438_vm1, %v1414_v44  ;;  %v1415_v46 = vadd.f32 %v2264_v22, %v1327_v45 }
 0x27e   :  { %v1337_v47 = vpop.xlane.xlu0 %1336 }
 0x27f   :  { %1480 = vst.msk [vmem:[%s2593_s7 + $0x148] sm:$0xff] %vm1438_vm1, %v1415_v46  ;;  %v1420_v48 = vadd.f32 %v2264_v22, %v1337_v47 }
 0x280   :  { %v1339_v49 = vpop.xlane.xlu1 %1338 }
 0x281   :  { %1485 = vst.msk [vmem:[%s2593_s7 + $0x170] sm:$0xff] %vm1438_vm1, %v1420_v48  ;;  %v1421_v50 = vadd.f32 %v2264_v22, %v1339_v49 }
 0x282   :  { %v1333_v51 = vpop.xlane.xlu0 %1332 }
 0x283   :  { %1486 = vst.msk [vmem:[%s2593_s7 + $0x178] sm:$0xff] %vm1438_vm1, %v1421_v50  ;;  %v1418_v52 = vadd.f32 %v2264_v22, %v1333_v51 }
 0x284   :  { %v1335_v53 = vpop.xlane.xlu1 %1334 }
 0x285   :  { %1483 = vst.msk [vmem:[%s2593_s7 + $0x160] sm:$0xff] %vm1438_vm1, %v1418_v52  ;;  %v1419_v54 = vadd.f32 %v2264_v22, %v1335_v53 }
 0x286   :  { %v1345_v55 = vpop.xlane.xlu0 %1344 }
 0x287   :  { %1484 = vst.msk [vmem:[%s2593_s7 + $0x168] sm:$0xff] %vm1438_vm1, %v1419_v54  ;;  %v1424_v56 = vadd.f32 %v2264_v22, %v1345_v55 }
 0x288   :  { %v1347_v57 = vpop.xlane.xlu1 %1346 }
 0x289   :  { %1489 = vst.msk [vmem:[%s2593_s7 + $0x190] sm:$0xff] %vm1438_vm1, %v1424_v56  ;;  %v1425_v58 = vadd.f32 %v2264_v22, %v1347_v57 }
 0x28a   :  { %v1341_v59 = vpop.xlane.xlu0 %1340 }
 0x28b   :  { %1490 = vst.msk [vmem:[%s2593_s7 + $0x198] sm:$0xff] %vm1438_vm1, %v1425_v58  ;;  %v1422_v60 = vadd.f32 %v2264_v22, %v1341_v59 }
 0x28c   :  { %v1343_v61 = vpop.xlane.xlu1 %1342 }
 0x28d   :  { %1487 = vst.msk [vmem:[%s2593_s7 + $0x180] sm:$0xff] %vm1438_vm1, %v1422_v60  ;;  %v1423_v62 = vadd.f32 %v2264_v22, %v1343_v61 }
 0x28e   :  { %v1353_v63 = vpop.xlane.xlu0 %1352 }
 0x28f   :  { %1488 = vst.msk [vmem:[%s2593_s7 + $0x188] sm:$0xff] %vm1438_vm1, %v1423_v62  ;;  %v1428_v0 = vadd.f32 %v2264_v22, %v1353_v63 }
 0x290   :  { %v1355_v1 = vpop.xlane.xlu1 %1354 }
 0x291   :  { %1493 = vst.msk [vmem:[%s2593_s7 + $0x1b0] sm:$0xff] %vm1438_vm1, %v1428_v0  ;;  %v1429_v2 = vadd.f32 %v2264_v22, %v1355_v1 }
 0x292   :  { %v1349_v3 = vpop.xlane.xlu0 %1348 }
 0x293   :  { %1494 = vst.msk [vmem:[%s2593_s7 + $0x1b8] sm:$0xff] %vm1438_vm1, %v1429_v2  ;;  %v1426_v4 = vadd.f32 %v2264_v22, %v1349_v3 }
 0x294   :  { %v1351_v5 = vpop.xlane.xlu1 %1350 }
 0x295   :  { %1491 = vst.msk [vmem:[%s2593_s7 + $0x1a0] sm:$0xff] %vm1438_vm1, %v1426_v4  ;;  %v1427_v6 = vadd.f32 %v2264_v22, %v1351_v5 }
 0x296   :  { %v1361_v7 = vpop.xlane.xlu0 %1360 }
 0x297   :  { %1492 = vst.msk [vmem:[%s2593_s7 + $0x1a8] sm:$0xff] %vm1438_vm1, %v1427_v6  ;;  %v1432_v8 = vadd.f32 %v2264_v22, %v1361_v7 }
 0x298   :  { %v1363_v9 = vpop.xlane.xlu1 %1362 }
 0x299   :  { %1497 = vst.msk [vmem:[%s2593_s7 + $0x1d0] sm:$0xff] %vm1438_vm1, %v1432_v8  ;;  %v1433_v10 = vadd.f32 %v2264_v22, %v1363_v9 }
 0x29a   :  { %v1357_v11 = vpop.xlane.xlu0 %1356 }
 0x29b   :  { %1498 = vst.msk [vmem:[%s2593_s7 + $0x1d8] sm:$0xff] %vm1438_vm1, %v1433_v10  ;;  %v1430_v12 = vadd.f32 %v2264_v22, %v1357_v11 }
 0x29c   :  { %v1359_v14 = vpop.xlane.xlu1 %1358 }
 0x29d   :  { %1495 = vst.msk [vmem:[%s2593_s7 + $0x1c0] sm:$0xff] %vm1438_vm1, %v1430_v12  ;;  %v1431_v15 = vadd.f32 %v2264_v22, %v1359_v14 }
 0x29e   :  { %v1365_v16 = vpop.xlane.xlu0 %1364 }
 0x29f   :  { %1496 = vst.msk [vmem:[%s2593_s7 + $0x1c8] sm:$0xff] %vm1438_vm1, %v1431_v15  ;;  %v1434_v17 = vadd.f32 %v2264_v22, %v1365_v16 }
 0x2a1   :  { %1499 = vst.msk [vmem:[%s2593_s7 + $0x1e0] sm:$0xff] %vm1438_vm1, %v1434_v17 }
 0x2a2   :  { %v1367_v18 = vpop.xlane.xlu1 %1366  ;;  %v1369_v19 = vpop.xlane.xlu0 %1368 }
 0x2a3   :  { %v1435_v20 = vadd.f32 %v2264_v22, %v1367_v18  ;;  %v1436_v21 = vadd.f32 %v2264_v22, %v1369_v19 }
 0x2a5   :  { %1500 = vst.msk [vmem:[%s2593_s7 + $0x1e8] sm:$0xff] %vm1438_vm1, %v1435_v20  ;;  %1501 = vst.msk [vmem:[%s2593_s7 + $0x1f0] sm:$0xff] %vm1438_vm1, %v1436_v21 }
 0x2a6   :  { %v1371_v13 = vpop.xlane.xlu1 %1370 }
 0x2a7   :  { %v1437_v23 = vadd.f32 %v2264_v22, %v1371_v13 }
 0x2a9   :  { %1502 = vst.msk [vmem:[%s2593_s7 + $0x1f8] sm:$0xff] %vm1438_vm1, %v1437_v23 }

</bundles_post_ra>
